<compile_context>
chip_gen: v6e
topology: v6e:2x2x1
jax: 0.10.0
libtpu: 0.0.40
codegen_flags: <defaults>
</compile_context>

<pallas_src>
import functools

import jax
import jax.numpy as jnp
from jax import lax
from jax.experimental import pallas as pl
from jax.experimental.pallas import tpu as pltpu


EPS = 1e-5
_K = 3        # kernel size
_STRIDE = 2   # conv stride


def _round_up(x, m):
    return (x + m - 1) // m * m


def _down_block_kernel(p_ref, w_ref, o_ref, acc_ref, *, apply_relu):
    """One batch element per grid step.

    p_ref  : (1, 4, Hq, Wq, Cin)  bf16  stride-2 phases of the reflect-padded input
    w_ref  : (9, Cin, Cp)         bf16  per-tap weights, Cout zero-padded to Cp
    o_ref  : (1, Cout, Ho*Wo)     f32   channels-major output block
    acc_ref: (Ho*Wo, Cp)          f32   conv accumulator scratch
    """
    hq, wq = p_ref.shape[2], p_ref.shape[3]
    ho, wo = hq - 1, wq - 1
    hw = ho * wo
    cin = p_ref.shape[4]

    # 3x3 / stride-2 convolution as 9 tap matmuls accumulated in f32.
    for ki in range(_K):
        for kj in range(_K):
            pidx = (ki % 2) * 2 + (kj % 2)        # which stride-2 phase
            di, dj = ki // 2, kj // 2             # unit-stride window offset
            win = p_ref[0, pidx, di:di + ho, dj:dj + wo, :]   # (Ho, Wo, Cin)
            win2d = win.reshape(hw, cin)                      # (HW, Cin)
            contrib = jnp.dot(win2d, w_ref[ki * _K + kj],
                              preferred_element_type=jnp.float32)
            if ki == 0 and kj == 0:
                acc_ref[...] = contrib
            else:
                acc_ref[...] += contrib

    conv = acc_ref[...]                                       # (HW, Cp) f32
    # InstanceNorm2d (affine=False, biased variance), one-pass statistics.
    inv_hw = 1.0 / hw
    mean = jnp.sum(conv, axis=0, keepdims=True) * inv_hw
    meansq = jnp.sum(conv * conv, axis=0, keepdims=True) * inv_hw
    var = jnp.maximum(meansq - mean * mean, 0.0)
    y = (conv - mean) * lax.rsqrt(var + EPS)                  # EUP rsqrt
    if apply_relu:
        y = jnp.maximum(y, 0.0)

    # Emit channels-major directly; slice the padded channels away.
    cout = o_ref.shape[1]
    o_ref[0] = y.T[:cout, :].astype(o_ref.dtype)


@functools.partial(
    jax.jit, static_argnames=("k", "stride", "use_relu", "compute_dtype"))
def g_down_block(x, weight, bias=None, *, k=3, stride=2, use_relu=True,
                 compute_dtype=jnp.bfloat16):
    """Conv2d(3x3, s=2, p=1, reflect) + InstanceNorm2d + ReLU, NCHW in/out.

    x: (N, Cin, H, W).  weight: (Cout, Cin, 3, 3).  bias: (Cout,) -- accepted
    for API parity but mathematically cancelled by the affine=False instance
    norm, so it is never loaded by the kernel.
    """
    assert k == _K and stride == _STRIDE, "only k=3, stride=2 supported"
    del bias  # exactly cancelled by the per-channel mean subtraction

    n, cin, h, w = x.shape
    cout = weight.shape[0]
    pad = k // 2

    ho = (h + 2 * pad - k) // stride + 1
    wo = (w + 2 * pad - k) // stride + 1
    hq, wq = ho + 1, wo + 1
    hw = ho * wo
    cp = _round_up(cout, 128)      # lane-dense accumulator / weight columns

    # Reflect pad (cheap: +2 rows/cols) then split into the 4 stride-2 phases:
    #   phases[n, pi, pj, a, b, c] == x_pad[n, c, 2a + pi, 2b + pj]
    xp = jnp.pad(x, ((0, 0), (0, 0), (pad, pad), (pad, pad)), mode="reflect")
    xp = jnp.pad(xp, ((0, 0), (0, 0),
                      (0, 2 * hq - (h + 2 * pad)),
                      (0, 2 * wq - (w + 2 * pad))))   # make spatial dims even
    phases = xp.reshape(n, cin, hq, 2, wq, 2)
    phases = jnp.transpose(phases, (0, 3, 5, 2, 4, 1))        # (N,2,2,Hq,Wq,Cin)
    phases = phases.reshape(n, 4, hq, wq, cin).astype(compute_dtype)

    # (Cout, Cin, 3, 3) -> (9, Cin, Cp): tap-major, Cout zero-padded to 128.
    w_taps = jnp.transpose(weight, (2, 3, 1, 0)).reshape(k * k, cin, cout)
    w_taps = jnp.pad(w_taps, ((0, 0), (0, 0), (0, cp - cout)))
    w_taps = w_taps.astype(compute_dtype)

    # Explicit scoped-VMEM budget: double-buffered blocks + f32 accumulator.
    isz = jnp.dtype(compute_dtype).itemsize
    osz = jnp.dtype(x.dtype).itemsize
    vmem_bytes = (2 * (4 * hq * wq * cin) * isz        # phases block (x2 bufs)
                  + 2 * (k * k * cin * cp) * isz       # weights
                  + 2 * (cout * hw) * osz              # output block
                  + hw * cp * 4                        # f32 accumulator
                  + (8 << 20))                         # headroom
    vmem_bytes = int(min(max(vmem_bytes, 32 << 20), 120 << 20))

    kernel = functools.partial(_down_block_kernel, apply_relu=use_relu)
    out = pl.pallas_call(
        kernel,
        out_shape=jax.ShapeDtypeStruct((n, cout, hw), x.dtype),
        grid_spec=pltpu.PrefetchScalarGridSpec(
            num_scalar_prefetch=0,
            grid=(n,),
            in_specs=[
                pl.BlockSpec((1, 4, hq, wq, cin), lambda i: (i, 0, 0, 0, 0)),
                pl.BlockSpec((k * k, cin, cp), lambda i: (0, 0, 0)),
            ],
            out_specs=pl.BlockSpec((1, cout, hw), lambda i: (i, 0, 0)),
            scratch_shapes=[pltpu.VMEM((hw, cp), jnp.float32)],
        ),
        compiler_params=pltpu.CompilerParams(
            dimension_semantics=("parallel",),
            vmem_limit_bytes=vmem_bytes),
    )(phases, w_taps)

    # (N, Cout, Ho*Wo) -> (N, Cout, Ho, Wo): free metadata reshape, no HBM copy.
    return out.reshape(n, cout, ho, wo)


def _reference(x, weight, bias, *, use_relu=True, compute_dtype=None):
    """Pure-JAX NCHW reference matching the PyTorch module semantics."""
    pad = _K // 2
    xp = jnp.pad(x, ((0, 0), (0, 0), (pad, pad), (pad, pad)), mode="reflect")
    lhs, rhs = xp, weight
    if compute_dtype is not None:
        lhs = lhs.astype(compute_dtype)
        rhs = rhs.astype(compute_dtype)
    conv = lax.conv_general_dilated(
        lhs, rhs, window_strides=(_STRIDE, _STRIDE), padding="VALID",
        dimension_numbers=("NCHW", "OIHW", "NCHW"),
        preferred_element_type=jnp.float32)
    conv = conv + bias.reshape(1, -1, 1, 1).astype(jnp.float32)
    mean = jnp.mean(conv, axis=(2, 3), keepdims=True)
    var = jnp.mean((conv - mean) ** 2, axis=(2, 3), keepdims=True)
    y = (conv - mean) * lax.rsqrt(var + EPS)
    return jnp.maximum(y, 0.0) if use_relu else y


if __name__ == "__main__":
    key = jax.random.PRNGKey(0)
    kx, kw, kb = jax.random.split(key, 3)

    N, Cin, H, W = 2, 4, 16, 16
    Cout, k, stride = 8, 3, 2

    x = jax.random.normal(kx, (N, Cin, H, W), dtype=jnp.float32)
    fan_in = Cin * k * k
    bound = 1.0 / (fan_in ** 0.5)
    weight = jax.random.uniform(kw, (Cout, Cin, k, k), jnp.float32, -bound, bound)
    bias = jax.random.uniform(kb, (Cout,), jnp.float32, -bound, bound)

    out = g_down_block(x, weight, bias, k=k, stride=stride)
    out = jax.block_until_ready(out)
    assert out.shape == (N, Cout, H // stride, W // stride), out.shape

    # Tight check against a reference using the same bf16 matmul operands
    # (f32 accumulation) -- isolates kernel correctness from cast error.
    ref_bf16 = _reference(x, weight, bias, compute_dtype=jnp.bfloat16)
    assert jnp.allclose(out, ref_bf16, rtol=2e-3, atol=2e-3), float(
        jnp.max(jnp.abs(out - ref_bf16)))

    # Loose check against the exact f32 PyTorch-equivalent math.
    ref_f32 = _reference(x, weight, bias)
    assert jnp.allclose(out, ref_f32, rtol=5e-2, atol=5e-2), float(
        jnp.max(jnp.abs(out - ref_f32)))

    print("KERNEL_OK")
</pallas_src>

<mosaic_0001>
module attributes {stable_mosaic.version = 11 : i64} {
  func.func @_down_block_kernel(%arg0: i32, %arg1: memref<1x4x9x9x4xbf16, #tpu.memory_space<vmem>>, %arg2: memref<9x4x128xbf16, #tpu.memory_space<vmem>>, %arg3: memref<1x8x64xf32, #tpu.memory_space<vmem>>, %arg4: memref<64x128xf32, #tpu.memory_space<vmem>>) attributes {dimension_semantics = [#tpu.dimension_semantics<parallel>], iteration_bounds = array<i64: 2>, scalar_prefetch = 0 : i64, scratch_operands = 1 : i64, tpu.core_type = #tpu.core_type<tc>, window_params = [{transform_indices = @transform_0, window_bounds = array<i64: 1, 4, 9, 9, 4>}, {pipeline_mode = #tpu.pipeline_mode<synchronous>, transform_indices = @transform_1, window_bounds = array<i64: 9, 4, 128>}, {transform_indices = @transform_2, window_bounds = array<i64: 1, 8, 64>}]} {
    %c0 = arith.constant 0 : index
    %c0_0 = arith.constant 0 : index
    %c0_1 = arith.constant 0 : index
    %c0_2 = arith.constant 0 : index
    %c0_3 = arith.constant 0 : index
    %0 = vector.load %arg1[%c0, %c0_0, %c0_1, %c0_2, %c0_3] : memref<1x4x9x9x4xbf16, #tpu.memory_space<vmem>>, vector<1x1x8x8x4xbf16>
    %1 = vector.shape_cast %0 : vector<1x1x8x8x4xbf16> to vector<8x8x4xbf16>
    %2 = vector.shape_cast %1 : vector<8x8x4xbf16> to vector<64x4xbf16>
    %c0_4 = arith.constant 0 : index
    %c0_5 = arith.constant 0 : index
    %c0_6 = arith.constant 0 : index
    %3 = vector.load %arg2[%c0_4, %c0_5, %c0_6] : memref<9x4x128xbf16, #tpu.memory_space<vmem>>, vector<1x4x128xbf16>
    %4 = vector.shape_cast %3 : vector<1x4x128xbf16> to vector<4x128xbf16>
    %cst = arith.constant dense<0.000000e+00> : vector<64x128xf32>
    %5 = tpu.matmul %2, %4, %cst {dimension_numbers = #tpu.dot_dimension_numbers<[1], [0], [0], [1], [0, 0, 1, 1], [], []>} : vector<64x4xbf16>, vector<4x128xbf16>, vector<64x128xf32> -> vector<64x128xf32>
    %c0_7 = arith.constant 0 : index
    %c0_8 = arith.constant 0 : index
    %6 = vector.load %arg4[%c0_7, %c0_8] : memref<64x128xf32, #tpu.memory_space<vmem>>, vector<64x128xf32>
    tpu.vector_store %arg4[%c0_7, %c0_8], %5 {strides = array<i32>} : memref<64x128xf32, #tpu.memory_space<vmem>>, vector<64x128xf32>,
    %c0_9 = arith.constant 0 : index
    %c1 = arith.constant 1 : index
    %c0_10 = arith.constant 0 : index
    %c0_11 = arith.constant 0 : index
    %c0_12 = arith.constant 0 : index
    %7 = vector.load %arg1[%c0_9, %c1, %c0_10, %c0_11, %c0_12] : memref<1x4x9x9x4xbf16, #tpu.memory_space<vmem>>, vector<1x1x8x8x4xbf16>
    %8 = vector.shape_cast %7 : vector<1x1x8x8x4xbf16> to vector<8x8x4xbf16>
    %9 = vector.shape_cast %8 : vector<8x8x4xbf16> to vector<64x4xbf16>
    %c1_13 = arith.constant 1 : index
    %c0_14 = arith.constant 0 : index
    %c0_15 = arith.constant 0 : index
    %10 = vector.load %arg2[%c1_13, %c0_14, %c0_15] : memref<9x4x128xbf16, #tpu.memory_space<vmem>>, vector<1x4x128xbf16>
    %11 = vector.shape_cast %10 : vector<1x4x128xbf16> to vector<4x128xbf16>
    %cst_16 = arith.constant dense<0.000000e+00> : vector<64x128xf32>
    %12 = tpu.matmul %9, %11, %cst_16 {dimension_numbers = #tpu.dot_dimension_numbers<[1], [0], [0], [1], [0, 0, 1, 1], [], []>} : vector<64x4xbf16>, vector<4x128xbf16>, vector<64x128xf32> -> vector<64x128xf32>
    %c0_17 = arith.constant 0 : index
    %c0_18 = arith.constant 0 : index
    %13 = vector.load %arg4[%c0_17, %c0_18] : memref<64x128xf32, #tpu.memory_space<vmem>>, vector<64x128xf32>
    %14 = arith.addf %13, %12 : vector<64x128xf32>
    %c0_19 = arith.constant 0 : index
    %c0_20 = arith.constant 0 : index
    %15 = vector.load %arg4[%c0_19, %c0_20] : memref<64x128xf32, #tpu.memory_space<vmem>>, vector<64x128xf32>
    tpu.vector_store %arg4[%c0_19, %c0_20], %14 {strides = array<i32>} : memref<64x128xf32, #tpu.memory_space<vmem>>, vector<64x128xf32>,
    %c0_21 = arith.constant 0 : index
    %c0_22 = arith.constant 0 : index
    %c0_23 = arith.constant 0 : index
    %c1_24 = arith.constant 1 : index
    %c0_25 = arith.constant 0 : index
    %16 = vector.load %arg1[%c0_21, %c0_22, %c0_23, %c1_24, %c0_25] : memref<1x4x9x9x4xbf16, #tpu.memory_space<vmem>>, vector<1x1x8x8x4xbf16>
    %17 = vector.shape_cast %16 : vector<1x1x8x8x4xbf16> to vector<8x8x4xbf16>
    %18 = vector.shape_cast %17 : vector<8x8x4xbf16> to vector<64x4xbf16>
    %c2 = arith.constant 2 : index
    %c0_26 = arith.constant 0 : index
    %c0_27 = arith.constant 0 : index
    %19 = vector.load %arg2[%c2, %c0_26, %c0_27] : memref<9x4x128xbf16, #tpu.memory_space<vmem>>, vector<1x4x128xbf16>
    %20 = vector.shape_cast %19 : vector<1x4x128xbf16> to vector<4x128xbf16>
    %cst_28 = arith.constant dense<0.000000e+00> : vector<64x128xf32>
    %21 = tpu.matmul %18, %20, %cst_28 {dimension_numbers = #tpu.dot_dimension_numbers<[1], [0], [0], [1], [0, 0, 1, 1], [], []>} : vector<64x4xbf16>, vector<4x128xbf16>, vector<64x128xf32> -> vector<64x128xf32>
    %c0_29 = arith.constant 0 : index
    %c0_30 = arith.constant 0 : index
    %22 = vector.load %arg4[%c0_29, %c0_30] : memref<64x128xf32, #tpu.memory_space<vmem>>, vector<64x128xf32>
    %23 = arith.addf %22, %21 : vector<64x128xf32>
    %c0_31 = arith.constant 0 : index
    %c0_32 = arith.constant 0 : index
    %24 = vector.load %arg4[%c0_31, %c0_32] : memref<64x128xf32, #tpu.memory_space<vmem>>, vector<64x128xf32>
    tpu.vector_store %arg4[%c0_31, %c0_32], %23 {strides = array<i32>} : memref<64x128xf32, #tpu.memory_space<vmem>>, vector<64x128xf32>,
    %c0_33 = arith.constant 0 : index
    %c2_34 = arith.constant 2 : index
    %c0_35 = arith.constant 0 : index
    %c0_36 = arith.constant 0 : index
    %c0_37 = arith.constant 0 : index
    %25 = vector.load %arg1[%c0_33, %c2_34, %c0_35, %c0_36, %c0_37] : memref<1x4x9x9x4xbf16, #tpu.memory_space<vmem>>, vector<1x1x8x8x4xbf16>
    %26 = vector.shape_cast %25 : vector<1x1x8x8x4xbf16> to vector<8x8x4xbf16>
    %27 = vector.shape_cast %26 : vector<8x8x4xbf16> to vector<64x4xbf16>
    %c3 = arith.constant 3 : index
    %c0_38 = arith.constant 0 : index
    %c0_39 = arith.constant 0 : index
    %28 = vector.load %arg2[%c3, %c0_38, %c0_39] : memref<9x4x128xbf16, #tpu.memory_space<vmem>>, vector<1x4x128xbf16>
    %29 = vector.shape_cast %28 : vector<1x4x128xbf16> to vector<4x128xbf16>
    %cst_40 = arith.constant dense<0.000000e+00> : vector<64x128xf32>
    %30 = tpu.matmul %27, %29, %cst_40 {dimension_numbers = #tpu.dot_dimension_numbers<[1], [0], [0], [1], [0, 0, 1, 1], [], []>} : vector<64x4xbf16>, vector<4x128xbf16>, vector<64x128xf32> -> vector<64x128xf32>
    %c0_41 = arith.constant 0 : index
    %c0_42 = arith.constant 0 : index
    %31 = vector.load %arg4[%c0_41, %c0_42] : memref<64x128xf32, #tpu.memory_space<vmem>>, vector<64x128xf32>
    %32 = arith.addf %31, %30 : vector<64x128xf32>
    %c0_43 = arith.constant 0 : index
    %c0_44 = arith.constant 0 : index
    %33 = vector.load %arg4[%c0_43, %c0_44] : memref<64x128xf32, #tpu.memory_space<vmem>>, vector<64x128xf32>
    tpu.vector_store %arg4[%c0_43, %c0_44], %32 {strides = array<i32>} : memref<64x128xf32, #tpu.memory_space<vmem>>, vector<64x128xf32>,
    %c0_45 = arith.constant 0 : index
    %c3_46 = arith.constant 3 : index
    %c0_47 = arith.constant 0 : index
    %c0_48 = arith.constant 0 : index
    %c0_49 = arith.constant 0 : index
    %34 = vector.load %arg1[%c0_45, %c3_46, %c0_47, %c0_48, %c0_49] : memref<1x4x9x9x4xbf16, #tpu.memory_space<vmem>>, vector<1x1x8x8x4xbf16>
    %35 = vector.shape_cast %34 : vector<1x1x8x8x4xbf16> to vector<8x8x4xbf16>
    %36 = vector.shape_cast %35 : vector<8x8x4xbf16> to vector<64x4xbf16>
    %c4 = arith.constant 4 : index
    %c0_50 = arith.constant 0 : index
    %c0_51 = arith.constant 0 : index
    %37 = vector.load %arg2[%c4, %c0_50, %c0_51] : memref<9x4x128xbf16, #tpu.memory_space<vmem>>, vector<1x4x128xbf16>
    %38 = vector.shape_cast %37 : vector<1x4x128xbf16> to vector<4x128xbf16>
    %cst_52 = arith.constant dense<0.000000e+00> : vector<64x128xf32>
    %39 = tpu.matmul %36, %38, %cst_52 {dimension_numbers = #tpu.dot_dimension_numbers<[1], [0], [0], [1], [0, 0, 1, 1], [], []>} : vector<64x4xbf16>, vector<4x128xbf16>, vector<64x128xf32> -> vector<64x128xf32>
    %c0_53 = arith.constant 0 : index
    %c0_54 = arith.constant 0 : index
    %40 = vector.load %arg4[%c0_53, %c0_54] : memref<64x128xf32, #tpu.memory_space<vmem>>, vector<64x128xf32>
    %41 = arith.addf %40, %39 : vector<64x128xf32>
    %c0_55 = arith.constant 0 : index
    %c0_56 = arith.constant 0 : index
    %42 = vector.load %arg4[%c0_55, %c0_56] : memref<64x128xf32, #tpu.memory_space<vmem>>, vector<64x128xf32>
    tpu.vector_store %arg4[%c0_55, %c0_56], %41 {strides = array<i32>} : memref<64x128xf32, #tpu.memory_space<vmem>>, vector<64x128xf32>,
    %c0_57 = arith.constant 0 : index
    %c2_58 = arith.constant 2 : index
    %c0_59 = arith.constant 0 : index
    %c1_60 = arith.constant 1 : index
    %c0_61 = arith.constant 0 : index
    %43 = vector.load %arg1[%c0_57, %c2_58, %c0_59, %c1_60, %c0_61] : memref<1x4x9x9x4xbf16, #tpu.memory_space<vmem>>, vector<1x1x8x8x4xbf16>
    %44 = vector.shape_cast %43 : vector<1x1x8x8x4xbf16> to vector<8x8x4xbf16>
    %45 = vector.shape_cast %44 : vector<8x8x4xbf16> to vector<64x4xbf16>
    %c5 = arith.constant 5 : index
    %c0_62 = arith.constant 0 : index
    %c0_63 = arith.constant 0 : index
    %46 = vector.load %arg2[%c5, %c0_62, %c0_63] : memref<9x4x128xbf16, #tpu.memory_space<vmem>>, vector<1x4x128xbf16>
    %47 = vector.shape_cast %46 : vector<1x4x128xbf16> to vector<4x128xbf16>
    %cst_64 = arith.constant dense<0.000000e+00> : vector<64x128xf32>
    %48 = tpu.matmul %45, %47, %cst_64 {dimension_numbers = #tpu.dot_dimension_numbers<[1], [0], [0], [1], [0, 0, 1, 1], [], []>} : vector<64x4xbf16>, vector<4x128xbf16>, vector<64x128xf32> -> vector<64x128xf32>
    %c0_65 = arith.constant 0 : index
    %c0_66 = arith.constant 0 : index
    %49 = vector.load %arg4[%c0_65, %c0_66] : memref<64x128xf32, #tpu.memory_space<vmem>>, vector<64x128xf32>
    %50 = arith.addf %49, %48 : vector<64x128xf32>
    %c0_67 = arith.constant 0 : index
    %c0_68 = arith.constant 0 : index
    %51 = vector.load %arg4[%c0_67, %c0_68] : memref<64x128xf32, #tpu.memory_space<vmem>>, vector<64x128xf32>
    tpu.vector_store %arg4[%c0_67, %c0_68], %50 {strides = array<i32>} : memref<64x128xf32, #tpu.memory_space<vmem>>, vector<64x128xf32>,
    %c0_69 = arith.constant 0 : index
    %c0_70 = arith.constant 0 : index
    %c1_71 = arith.constant 1 : index
    %c0_72 = arith.constant 0 : index
    %c0_73 = arith.constant 0 : index
    %52 = vector.load %arg1[%c0_69, %c0_70, %c1_71, %c0_72, %c0_73] : memref<1x4x9x9x4xbf16, #tpu.memory_space<vmem>>, vector<1x1x8x8x4xbf16>
    %53 = vector.shape_cast %52 : vector<1x1x8x8x4xbf16> to vector<8x8x4xbf16>
    %54 = vector.shape_cast %53 : vector<8x8x4xbf16> to vector<64x4xbf16>
    %c6 = arith.constant 6 : index
    %c0_74 = arith.constant 0 : index
    %c0_75 = arith.constant 0 : index
    %55 = vector.load %arg2[%c6, %c0_74, %c0_75] : memref<9x4x128xbf16, #tpu.memory_space<vmem>>, vector<1x4x128xbf16>
    %56 = vector.shape_cast %55 : vector<1x4x128xbf16> to vector<4x128xbf16>
    %cst_76 = arith.constant dense<0.000000e+00> : vector<64x128xf32>
    %57 = tpu.matmul %54, %56, %cst_76 {dimension_numbers = #tpu.dot_dimension_numbers<[1], [0], [0], [1], [0, 0, 1, 1], [], []>} : vector<64x4xbf16>, vector<4x128xbf16>, vector<64x128xf32> -> vector<64x128xf32>
    %c0_77 = arith.constant 0 : index
    %c0_78 = arith.constant 0 : index
    %58 = vector.load %arg4[%c0_77, %c0_78] : memref<64x128xf32, #tpu.memory_space<vmem>>, vector<64x128xf32>
    %59 = arith.addf %58, %57 : vector<64x128xf32>
    %c0_79 = arith.constant 0 : index
    %c0_80 = arith.constant 0 : index
    %60 = vector.load %arg4[%c0_79, %c0_80] : memref<64x128xf32, #tpu.memory_space<vmem>>, vector<64x128xf32>
    tpu.vector_store %arg4[%c0_79, %c0_80], %59 {strides = array<i32>} : memref<64x128xf32, #tpu.memory_space<vmem>>, vector<64x128xf32>,
    %c0_81 = arith.constant 0 : index
    %c1_82 = arith.constant 1 : index
    %c1_83 = arith.constant 1 : index
    %c0_84 = arith.constant 0 : index
    %c0_85 = arith.constant 0 : index
    %61 = vector.load %arg1[%c0_81, %c1_82, %c1_83, %c0_84, %c0_85] : memref<1x4x9x9x4xbf16, #tpu.memory_space<vmem>>, vector<1x1x8x8x4xbf16>
    %62 = vector.shape_cast %61 : vector<1x1x8x8x4xbf16> to vector<8x8x4xbf16>
    %63 = vector.shape_cast %62 : vector<8x8x4xbf16> to vector<64x4xbf16>
    %c7 = arith.constant 7 : index
    %c0_86 = arith.constant 0 : index
    %c0_87 = arith.constant 0 : index
    %64 = vector.load %arg2[%c7, %c0_86, %c0_87] : memref<9x4x128xbf16, #tpu.memory_space<vmem>>, vector<1x4x128xbf16>
    %65 = vector.shape_cast %64 : vector<1x4x128xbf16> to vector<4x128xbf16>
    %cst_88 = arith.constant dense<0.000000e+00> : vector<64x128xf32>
    %66 = tpu.matmul %63, %65, %cst_88 {dimension_numbers = #tpu.dot_dimension_numbers<[1], [0], [0], [1], [0, 0, 1, 1], [], []>} : vector<64x4xbf16>, vector<4x128xbf16>, vector<64x128xf32> -> vector<64x128xf32>
    %c0_89 = arith.constant 0 : index
    %c0_90 = arith.constant 0 : index
    %67 = vector.load %arg4[%c0_89, %c0_90] : memref<64x128xf32, #tpu.memory_space<vmem>>, vector<64x128xf32>
    %68 = arith.addf %67, %66 : vector<64x128xf32>
    %c0_91 = arith.constant 0 : index
    %c0_92 = arith.constant 0 : index
    %69 = vector.load %arg4[%c0_91, %c0_92] : memref<64x128xf32, #tpu.memory_space<vmem>>, vector<64x128xf32>
    tpu.vector_store %arg4[%c0_91, %c0_92], %68 {strides = array<i32>} : memref<64x128xf32, #tpu.memory_space<vmem>>, vector<64x128xf32>,
    %c0_93 = arith.constant 0 : index
    %c0_94 = arith.constant 0 : index
    %c1_95 = arith.constant 1 : index
    %c1_96 = arith.constant 1 : index
    %c0_97 = arith.constant 0 : index
    %70 = vector.load %arg1[%c0_93, %c0_94, %c1_95, %c1_96, %c0_97] : memref<1x4x9x9x4xbf16, #tpu.memory_space<vmem>>, vector<1x1x8x8x4xbf16>
    %71 = vector.shape_cast %70 : vector<1x1x8x8x4xbf16> to vector<8x8x4xbf16>
    %72 = vector.shape_cast %71 : vector<8x8x4xbf16> to vector<64x4xbf16>
    %c8 = arith.constant 8 : index
    %c0_98 = arith.constant 0 : index
    %c0_99 = arith.constant 0 : index
    %73 = vector.load %arg2[%c8, %c0_98, %c0_99] : memref<9x4x128xbf16, #tpu.memory_space<vmem>>, vector<1x4x128xbf16>
    %74 = vector.shape_cast %73 : vector<1x4x128xbf16> to vector<4x128xbf16>
    %cst_100 = arith.constant dense<0.000000e+00> : vector<64x128xf32>
    %75 = tpu.matmul %72, %74, %cst_100 {dimension_numbers = #tpu.dot_dimension_numbers<[1], [0], [0], [1], [0, 0, 1, 1], [], []>} : vector<64x4xbf16>, vector<4x128xbf16>, vector<64x128xf32> -> vector<64x128xf32>
    %c0_101 = arith.constant 0 : index
    %c0_102 = arith.constant 0 : index
    %76 = vector.load %arg4[%c0_101, %c0_102] : memref<64x128xf32, #tpu.memory_space<vmem>>, vector<64x128xf32>
    %77 = arith.addf %76, %75 : vector<64x128xf32>
    %c0_103 = arith.constant 0 : index
    %c0_104 = arith.constant 0 : index
    %78 = vector.load %arg4[%c0_103, %c0_104] : memref<64x128xf32, #tpu.memory_space<vmem>>, vector<64x128xf32>
    tpu.vector_store %arg4[%c0_103, %c0_104], %77 {strides = array<i32>} : memref<64x128xf32, #tpu.memory_space<vmem>>, vector<64x128xf32>,
    %c0_105 = arith.constant 0 : index
    %c0_106 = arith.constant 0 : index
    %79 = vector.load %arg4[%c0_105, %c0_106] : memref<64x128xf32, #tpu.memory_space<vmem>>, vector<64x128xf32>
    %cst_107 = arith.constant dense<0.000000e+00> : vector<128xf32>
    %80 = vector.multi_reduction <add>, %79, %cst_107 [0] : vector<64x128xf32> to vector<128xf32>
    %81 = vector.shape_cast %80 : vector<128xf32> to vector<1x128xf32>
    %cst_108 = arith.constant 1.562500e-02 : f32
    %82 = vector.broadcast %cst_108 : f32 to vector<1x128xf32>
    %83 = arith.mulf %81, %82 : vector<1x128xf32>
    %84 = arith.mulf %79, %79 : vector<64x128xf32>
    %cst_109 = arith.constant dense<0.000000e+00> : vector<128xf32>
    %85 = vector.multi_reduction <add>, %84, %cst_109 [0] : vector<64x128xf32> to vector<128xf32>
    %86 = vector.shape_cast %85 : vector<128xf32> to vector<1x128xf32>
    %cst_110 = arith.constant 1.562500e-02 : f32
    %87 = vector.broadcast %cst_110 : f32 to vector<1x128xf32>
    %88 = arith.mulf %86, %87 : vector<1x128xf32>
    %89 = arith.mulf %83, %83 : vector<1x128xf32>
    %90 = arith.subf %88, %89 : vector<1x128xf32>
    %cst_111 = arith.constant 0.000000e+00 : f32
    %91 = vector.broadcast %cst_111 : f32 to vector<1x128xf32>
    %92 = arith.maximumf %90, %91 : vector<1x128xf32>
    %93 = vector.broadcast %83 : vector<1x128xf32> to vector<64x128xf32>
    %94 = arith.subf %79, %93 : vector<64x128xf32>
    %cst_112 = arith.constant 9.99999974E-6 : f32
    %95 = vector.broadcast %cst_112 : f32 to vector<1x128xf32>
    %96 = arith.addf %92, %95 : vector<1x128xf32>
    %97 = math.rsqrt %96 : vector<1x128xf32>
    %98 = vector.broadcast %97 : vector<1x128xf32> to vector<64x128xf32>
    %99 = arith.mulf %94, %98 : vector<64x128xf32>
    %cst_113 = arith.constant 0.000000e+00 : f32
    %100 = vector.broadcast %cst_113 : f32 to vector<64x128xf32>
    %101 = arith.maximumf %99, %100 : vector<64x128xf32>
    %102 = tpu.transpose %101, [1, 0] : vector<64x128xf32> -> vector<128x64xf32>
    %103 = vector.extract_strided_slice %102 {offsets = [0, 0], sizes = [8, 64], strides = [1, 1]} : vector<128x64xf32> to vector<8x64xf32>
    %c0_114 = arith.constant 0 : index
    %c0_115 = arith.constant 0 : index
    %c0_116 = arith.constant 0 : index
    %104 = vector.load %arg3[%c0_114, %c0_115, %c0_116] : memref<1x8x64xf32, #tpu.memory_space<vmem>>, vector<1x8x64xf32>
    %105 = vector.shape_cast %104 : vector<1x8x64xf32> to vector<8x64xf32>
    %106 = vector.shape_cast %103 : vector<8x64xf32> to vector<1x8x64xf32>
    tpu.vector_store %arg3[%c0_114, %c0_115, %c0_116], %106 {strides = array<i32>} : memref<1x8x64xf32, #tpu.memory_space<vmem>>, vector<1x8x64xf32>,
    return
  }
  func.func @transform_0(%arg0: i32) -> (i32, i32, i32, i32, i32) {
    %c0_i32 = arith.constant 0 : i32
    %c0_i32_0 = arith.constant 0 : i32
    %c0_i32_1 = arith.constant 0 : i32
    %c0_i32_2 = arith.constant 0 : i32
    %c0_i32_3 = arith.constant 0 : i32
    return %arg0, %c0_i32, %c0_i32_0, %c0_i32_1, %c0_i32_2 : i32, i32, i32, i32, i32
  }
  func.func @transform_1(%arg0: i32) -> (i32, i32, i32) {
    %c0_i32 = arith.constant 0 : i32
    %c0_i32_0 = arith.constant 0 : i32
    %c0_i32_1 = arith.constant 0 : i32
    %c0_i32_2 = arith.constant 0 : i32
    return %c0_i32, %c0_i32_0, %c0_i32_1 : i32, i32, i32
  }
  func.func @transform_2(%arg0: i32) -> (i32, i32, i32) {
    %c0_i32 = arith.constant 0 : i32
    %c0_i32_0 = arith.constant 0 : i32
    %c0_i32_1 = arith.constant 0 : i32
    return %arg0, %c0_i32, %c0_i32_0 : i32, i32, i32
  }
}

</mosaic_0001>

<bundles_post_ra>
// kernel: g_down_block.1
= control target key start
LH: loop header
LB: loop body
LE: loop exit
PB: predicated region body
PF: predicated region fallthrough
CT: control target
= control target key end

     0   :  { %s2205_s9 = smov 0   ;;  %s2492_s0 = inlined_call_operand.vmem [shape: bf16[2,4,9,9,4], index: 0, kind: input, shape index: {}]   ;;  %s2493_s1 = inlined_call_operand.vmem [shape: bf16[9,4,128], index: 1, kind: input, shape index: {}]   ;;  %s2494_s2 = inlined_call_operand.vmem [shape: f32[2,8,64], index: 2, kind: output, shape index: {}]  }
   0x1 LB: > { %s1838_s10 = sadd.s32 4294967295, %s2188_s9   ;;  %p1842_p0 = scmp.ge.s32.totalorder %s2188_s9, 1  ;;  %s2188_s9 = sphi %s2205_s9, %s12_s9  }
   0x2   : > { %p112_p1 = scmp.lt.s32.totalorder %s2188_s9, 3 }
   0x4   : > { %p113_p2 = pnand %p1842_p0, %p112_p1 }
   0x5   : > { %p133_p3 = scmp.lt.s32.totalorder (!%p113_p2), %s1838_s10, 1 }
   0x6   : > { %116 = sbr.rel (%p113_p2) target bundleno = 465 (0x1d1), region = 28 }
   0xb   : > { %v151_v0 = vld [vmem:[%s2493_s1] sm:$0x3]  ;;  %vm185_vm0 = vcmask 1041408   ;;  %v1861_v2 = vld [vmem:[%s2493_s1 + $0x2] sm:$0x3]  ;;  %s2498_s10 = smov (!%p133_p3, %s1838_s10), 1 }
   0xc   : > { %2137 = vmatprep.subr.msk.bf16.mxu1 %vm185_vm0, %v151_v0  ;;  %2136 = vmatprep.subr.msk.bf16.mxu0 %vm185_vm0, %v151_v0  ;;  %v187_v1 = vsel %vm185_vm0, %v151_v0, 0  ;;  %v1870_v3 = vld [vmem:[%s2493_s1 + $0x4] sm:$0x3]  ;;  %s2146_s17 = smul.u32 288, %s2498_s10  ;;  %vm172_vm1 = vcmask 31744   ;;  %v306_v4 = vsel %vm185_vm0, %v1861_v2, 0 }
   0xd   : > { %2135 = vmatpush3.bf16.msra.mxu1 %v187_v1  ;;  %2045 = vmatpush3.bf16.msra.mxu0 %v187_v1  ;;  %v555_v5 = vsel %vm185_vm0, %v1870_v3, 0  ;;  %v1887_v7 = vld [vmem:[%s2493_s1 + $0x6] sm:$0x3]  ;;  %v1904_v8 = vld [vmem:[%s2493_s1 + $0x8] sm:$0x3]  ;;  %s1844_s5 = sshll.u32 %s2498_s10, 3 }
   0xe   : > { %2138 = vmatprep.subr.msk.bf16.mxu1 %vm185_vm0, %v1861_v2  ;;  %2139 = vmatprep.subr.msk.bf16.mxu0 %vm185_vm0, %v1870_v3  ;;  %s2233_s20 = scalar_lea.vmem %s2492_s0, %s2146_s17  ;;  %vm413_vm2 = vsmask.f32 3328  ;;  %vm414_vm3 = vsmask.f32 7440  ;;  %v690_v13 = vsel %vm185_vm0, %v1887_v7, 0  ;;  %v2254_v14 = vsel %vm185_vm0, %v1904_v8, 0  ;;  %s141_s8 = scalar_lea.vmem %s2494_s2, %s1844_s5 }
   0xf   : > { %v2156_v6 = vld [vmem:[%s2233_s20] ss:$8 sps:$4 sm:$0xff]   ;;  %v2158_v10 = vld [vmem:[%s2233_s20 + $0x10] ss:$8 sps:$4 sm:$0xff]   ;;  %v398_v16 = vld [vmem:[%s2233_s20 + $0x4] sm:$0x1] }
  0x10   : > { %v2157_v9 = vld [vmem:[%s2233_s20 + $0x20] ss:$8 sps:$4 sm:$0xff]   ;;  %2046 = vmatprep.mubr.msk.bf16.mxu0 %vm172_vm1, %v2156_v6  ;;  %v2159_v11 = vld [vmem:[%s2233_s20 + $0x30] ss:$8 sps:$4 sm:$0xff]   ;;  %v400_v19 = vld [vmem:[%s2233_s20 + $0xc] sm:$0x1] }
  0x11   : > { %2050 = vmatprep.mubr.msk.bf16.mxu1 %vm172_vm1, %v2157_v9  ;;  %2047 = vmatmul.mubr.msk.bf16.vlgmr.msra.gmra.mxu0 %vm172_vm1, %v2158_v10  ;;  %v2160_v12 = vld [vmem:[%s2233_s20 + $0x48] ss:$8 sps:$4 sm:$0xff]   ;;  %v397_v15 = vld [vmem:[%s2233_s20] sm:$0xf]  ;;  %v426_v22 = vshll.u32 %v398_v16, 16  ;;  %v440_v25 = vshll.u32 %v400_v19, 16  ;;  %vm2275_vm4 = vmor %vm413_vm2, %vm414_vm3 }
  0x12   : > { %2051 = vmatmul.mubr.msk.bf16.vlgmr.msra.gmra.mxu1 %vm172_vm1, %v2159_v11  ;;  %2065 = vmatpush3.bf16.msra.mxu0 %v555_v5  ;;  %v399_v17 = vld [vmem:[%s2233_s20 + $0x8] sm:$0xf]  ;;  %v2161_v18 = vld [vmem:[%s2233_s20 + $0x58] ss:$8 sps:$4 sm:$0xff]   ;;  %v417_v20 = vshrl.u32 %v397_v15, 16  ;;  %v420_v21 = vshll.u32 %v397_v15, 16 }
  0x13   : > { %2055 = vmatpush3.bf16.msra.mxu1 %v306_v4  ;;  %2056 = vmatprep.mubr.msk.bf16.mxu1 %vm172_vm1, %v2160_v12  ;;  %v431_v23 = vshrl.u32 %v399_v17, 16  ;;  %v434_v24 = vshll.u32 %v399_v17, 16  ;;  %v401_v26 = vld [vmem:[%s2233_s20 + $0x10] sm:$0xf]  ;;  %v402_v27 = vld [vmem:[%s2233_s20 + $0x14] sm:$0x1] }
  0x14   : > { %2140 = vmatprep.subr.msk.bf16.mxu1 %vm185_vm0, %v1887_v7  ;;  %2141 = vmatprep.subr.msk.bf16.mxu0 %vm185_vm0, %v1904_v8  ;;  %v419_v28 = vrot.slane %v417_v20, 4  ;;  %v422_v29 = vrot.slane %v420_v21, 5  ;;  %v428_v30 = vrot.slane %v426_v22, 5  ;;  %v403_v32 = vld [vmem:[%s2233_s20 + $0x18] sm:$0xf]  ;;  %v442_v34 = vrot.slane %v440_v25, 5 }
  0x15   : > { %v433_v31 = vrot.slane %v431_v23, 4  ;;  %v436_v33 = vrot.slane %v434_v24, 5  ;;  %v404_v35 = vld [vmem:[%s2233_s20 + $0x1c] sm:$0x1]  ;;  %v445_v36 = vshrl.u32 %v401_v26, 16  ;;  %v448_v37 = vshll.u32 %v401_v26, 16 }
  0x16   : > { %v2271_v38 = vld [vmem:[%s2493_s1 + $0xa] sm:$0x3]  ;;  %v423_v39 = vor.u32 %v422_v29, %v419_v28  ;;  %v454_v40 = vshll.u32 %v402_v27, 16  ;;  %v459_v41 = vshrl.u32 %v403_v32, 16  ;;  %v462_v42 = vshll.u32 %v403_v32, 16 }
  0x17   : > { %v437_v44 = vor.u32 %v436_v33, %v433_v31  ;;  %v447_v45 = vrot.slane %v445_v36, 4  ;;  %v450_v46 = vrot.slane %v448_v37, 5  ;;  %v468_v47 = vshll.u32 %v404_v35, 16  ;;  %v2162_v52 = vld [vmem:[%s2233_s20 + $0x68] ss:$8 sps:$4 sm:$0xff]  }
  0x18   : > { %v424_v48 = vrot.slane %v423_v39, 4  ;;  %v456_v49 = vrot.slane %v454_v40, 5  ;;  %v461_v50 = vrot.slane %v459_v41, 4  ;;  %v464_v51 = vrot.slane %v462_v42, 5  ;;  %v2163_v58 = vld [vmem:[%s2233_s20 + $0x78] ss:$8 sps:$4 sm:$0xff]  }
  0x19   : > { %v438_v53 = vrot.slane %v437_v44, 4  ;;  %v451_v54 = vor.u32 %v450_v46, %v447_v45  ;;  %v470_v55 = vrot.slane %v468_v47, 5  ;;  %v405_v59 = vld [vmem:[%s2233_s20 + $0x20] sm:$0xf]  ;;  %v406_v60 = vld [vmem:[%s2233_s20 + $0x24] sm:$0x1] }
  0x1a   : > { %2057 = vmatmul.mubr.msk.bf16.vlgmr.msra.gmra.mxu1 %vm172_vm1, %v2161_v18  ;;  %v429_v56 = vsel %vm2275_vm4, %v424_v48, %v428_v30  ;;  %v465_v57 = vor.u32 %v464_v51, %v461_v50  ;;  %v407_v63 = vld [vmem:[%s2233_s20 + $0x28] sm:$0xf]  ;;  %v408_v0 = vld [vmem:[%s2233_s20 + $0x2c] sm:$0x1]  ;;  %v473_v1 = vshrl.u32 %v405_v59, 16  ;;  %v476_v4 = vshll.u32 %v405_v59, 16 }
  0x1b   : > { %2075 = vmatpush3.bf16.msra.mxu1 %v690_v13  ;;  %2060 = vmatprep.mubr.msk.bf16.mxu1 %vm172_vm1, %v2162_v52  ;;  %v443_v61 = vsel %vm2275_vm4, %v438_v53, %v442_v34  ;;  %v452_v62 = vrot.slane %v451_v54, 4  ;;  %v482_v5 = vshll.u32 %v406_v60, 16  ;;  %v409_v6 = vld [vmem:[%s2233_s20 + $0x30] sm:$0xf]  ;;  %v487_v9 = vshrl.u32 %v407_v63, 16 }
  0x1c   : > { %2142 = vmatprep.subr.msk.bf16.mxu1 %vm185_vm0, %v2271_v38  ;;  %v1871_v2 = vcombine.low %v429_v56, %v443_v61  ;;  %v466_v3 = vrot.slane %v465_v57, 4  ;;  %v475_v8 = vrot.slane %v473_v1, 4  ;;  %v490_v10 = vshll.u32 %v407_v63, 16  ;;  %v410_v11 = vld [vmem:[%s2233_s20 + $0x34] sm:$0x1] }
  0x1d   : > { %v457_v7 = vsel %vm2275_vm4, %v452_v62, %v456_v49  ;;  %v478_v13 = vrot.slane %v476_v4, 5  ;;  %v484_v15 = vrot.slane %v482_v5, 5  ;;  %v496_v16 = vshll.u32 %v408_v0, 16  ;;  %v411_v17 = vld [vmem:[%s2233_s20 + $0x38] sm:$0xf] }
  0x1e   : > { %2066 = vmatprep.mubr.msk.bf16.mxu0 %vm172_vm1, %v1871_v2  ;;  %v471_v12 = vsel %vm2275_vm4, %v466_v3, %v470_v55  ;;  %v1946_v18 = vld [vmem:[%s2493_s1 + $0xc] sm:$0x3]  ;;  %v489_v20 = vrot.slane %v487_v9, 4  ;;  %v492_v21 = vrot.slane %v490_v10, 5  ;;  %v412_v22 = vld [vmem:[%s2233_s20 + $0x3c] sm:$0x1] }
  0x1f   : > { %v1872_v19 = vcombine.low %v457_v7, %v471_v12  ;;  %v501_v23 = vshrl.u32 %v409_v6, 16  ;;  %v479_v24 = vor.u32 %v478_v13, %v475_v8  ;;  %v498_v25 = vrot.slane %v496_v16, 5  ;;  %v2164_v35 = vld [vmem:[%s2233_s20 + $0x90] ss:$8 sps:$4 sm:$0xff]   ;;  %v2165_v44 = vld [vmem:[%s2233_s20 + $0xa0] ss:$8 sps:$4 sm:$0xff]  }
  0x20   : > { %v504_v26 = vshll.u32 %v409_v6, 16  ;;  %v510_v27 = vshll.u32 %v410_v11, 16  ;;  %v493_v28 = vor.u32 %v492_v21, %v489_v20  ;;  %v515_v30 = vshrl.u32 %v411_v17, 16  ;;  %v1963_v51 = vld [vmem:[%s2493_s1 + $0xe] sm:$0x3] }
  0x21   : > { %2067 = vmatmul.mubr.msk.bf16.vlgmr.msra.gmra.mxu0 %vm172_vm1, %v1872_v19  ;;  %v503_v29 = vrot.slane %v501_v23, 4  ;;  %v518_v31 = vshll.u32 %v411_v17, 16  ;;  %v480_v32 = vrot.slane %v479_v24, 4  ;;  %v524_v34 = vshll.u32 %v412_v22, 16  ;;  %v2168_v53 = vld [vmem:[%s2233_s20 + $0xb0] ss:$8 sps:$4 sm:$0xff]  }
  0x22   : > { %2061 = vmatmul.mubr.msk.bf16.gmra.mxu1 %vm172_vm1, %v2163_v58  ;;  %2085 = vmatpush3.bf16.msra.mxu0 %v2254_v14  ;;  %v506_v33 = vrot.slane %v504_v26, 5  ;;  %v494_v36 = vrot.slane %v493_v28, 4  ;;  %v517_v37 = vrot.slane %v515_v30, 4  ;;  %v512_v42 = vrot.slane %v510_v27, 5  ;;  %v2169_v57 = vld [vmem:[%s2233_s20 + $0xc0] ss:$8 sps:$4 sm:$0xff]  }
  0x23   : > { %v520_v39 = vrot.slane %v518_v31, 5  ;;  %2143 = vmatprep.subr.msk.bf16.mxu0 %vm185_vm0, %v1946_v18  ;;  %v485_v40 = vsel %vm2275_vm4, %v480_v32, %v484_v15  ;;  %2076 = vmatprep.mubr.msk.bf16.mxu1 %vm172_vm1, %v2164_v35  ;;  %v526_v46 = vrot.slane %v524_v34, 5  ;;  %v1071_v49 = vsel %vm185_vm0, %v2271_v38, 0  ;;  %v2166_v38 = vld [vmem:[%s2233_s20 + $0xd8] ss:$8 sps:$4 sm:$0xff]  }
  0x24   : > { %v507_v41 = vor.u32 %v506_v33, %v503_v29  ;;  %v499_v14 = vsel %vm2275_vm4, %v494_v36, %v498_v25  ;;  %v1206_v56 = vsel %vm185_vm0, %v1946_v18, 0  ;;  %v1913_v58 = vld [vmem:[%s2233_s20 + $0x90] sm:$0xf]  ;;  %v1914_v59 = vld [vmem:[%s2233_s20 + $0x94] sm:$0x1]  ;;  %v1341_v31 = vsel %vm185_vm0, %v1963_v51, 0 }
  0x25   : > { %v521_v45 = vor.u32 %v520_v39, %v517_v37  ;;  %v1873_v47 = vcombine.low %v485_v40, %v499_v14  ;;  %v1915_v60 = vld [vmem:[%s2233_s20 + $0x98] sm:$0xf]  ;;  %v1916_v61 = vld [vmem:[%s2233_s20 + $0x9c] sm:$0x1]  ;;  %v933_v62 = vshrl.u32 %v1913_v58, 16  ;;  %v936_v63 = vshll.u32 %v1913_v58, 16 }
  0x26   : > { %v508_v48 = vrot.slane %v507_v41, 4  ;;  %v942_v0 = vshll.u32 %v1914_v59, 16  ;;  %v947_v1 = vshrl.u32 %v1915_v60, 16  ;;  %v1917_v2 = vld [vmem:[%s2233_s20 + $0xa0] sm:$0xf]  ;;  %v950_v4 = vshll.u32 %v1915_v60, 16 }
  0x27   : > { %v522_v50 = vrot.slane %v521_v45, 4  ;;  %2070 = vmatprep.mubr.msk.bf16.mxu0 %vm172_vm1, %v1873_v47  ;;  %v2167_v3 = vld [vmem:[%s2233_s20 + $0xe8] ss:$8 sps:$4 sm:$0xff]   ;;  %v956_v5 = vshll.u32 %v1916_v61, 16  ;;  %v1918_v6 = vld [vmem:[%s2233_s20 + $0xa4] sm:$0x1] }
  0x28   : > { %v513_v52 = vsel %vm2275_vm4, %v508_v48, %v512_v42  ;;  %v1919_v7 = vld [vmem:[%s2233_s20 + $0xa8] sm:$0xf]  ;;  %v2170_v8 = vld [vmem:[%s2233_s20 + $0xf8] ss:$8 sps:$4 sm:$0xff]   ;;  %v935_v9 = vrot.slane %v933_v62, 4  ;;  %v938_v10 = vrot.slane %v936_v63, 5 }
  0x29   : > { %v527_v54 = vsel %vm2275_vm4, %v522_v50, %v526_v46  ;;  %v944_v11 = vrot.slane %v942_v0, 5  ;;  %v949_v12 = vrot.slane %v947_v1, 4  ;;  %v1920_v13 = vld [vmem:[%s2233_s20 + $0xac] sm:$0x1]  ;;  %v952_v15 = vrot.slane %v950_v4, 5 }
  0x2a   : > { %2077 = vmatmul.mubr.msk.bf16.vlgmr.msra.gmra.mxu1 %vm172_vm1, %v2165_v44  ;;  %v1874_v55 = vcombine.low %v513_v52, %v527_v54  ;;  %v958_v16 = vrot.slane %v956_v5, 5  ;;  %v961_v17 = vshrl.u32 %v1917_v2, 16  ;;  %v964_v18 = vshll.u32 %v1917_v2, 16  ;;  %v2349_v27 = vld [vmem:[%s2493_s1 + $0x10] sm:$0x3] }
  0x2b   : > { %2095 = vmatpush3.bf16.msra.mxu1 %v1071_v49  ;;  %2080 = vmatprep.mubr.msk.bf16.mxu1 %vm172_vm1, %v2168_v53  ;;  %v939_v19 = vor.u32 %v938_v10, %v935_v9  ;;  %v970_v20 = vshll.u32 %v1918_v6, 16  ;;  %v975_v21 = vshrl.u32 %v1919_v7, 16  ;;  %v978_v22 = vshll.u32 %v1919_v7, 16  ;;  %v1921_v39 = vld [vmem:[%s2233_s20 + $0xb0] sm:$0xf] }
  0x2c   : > { %2144 = vmatprep.subr.msk.bf16.mxu1 %vm185_vm0, %v1963_v51  ;;  %2071 = vmatmul.mubr.msk.bf16.gmra.mxu0 %vm172_vm1, %v1874_v55  ;;  %v953_v23 = vor.u32 %v952_v15, %v949_v12  ;;  %v963_v24 = vrot.slane %v961_v17, 4  ;;  %v966_v25 = vrot.slane %v964_v18, 5  ;;  %v984_v26 = vshll.u32 %v1920_v13, 16  ;;  %v1922_v40 = vld [vmem:[%s2233_s20 + $0xb4] sm:$0x1] }
  0x2d   : > { %2086 = vmatprep.mubr.msk.bf16.mxu0 %vm172_vm1, %v2166_v38  ;;  %v940_v28 = vrot.slane %v939_v19, 4  ;;  %v977_v29 = vrot.slane %v975_v21, 4  ;;  %v980_v30 = vrot.slane %v978_v22, 5  ;;  %v972_v34 = vrot.slane %v970_v20, 5  ;;  %v1923_v41 = vld [vmem:[%s2233_s20 + $0xb8] sm:$0xf] }
  0x2e   : > { %v954_v32 = vrot.slane %v953_v23, 4  ;;  %v967_v33 = vor.u32 %v966_v25, %v963_v24  ;;  %v986_v35 = vrot.slane %v984_v26, 5  ;;  %v2171_v42 = vld [vmem:[%s2233_s20 + $0x108] ss:$8 sps:$4 sm:$0xff]   ;;  %v1924_v45 = vld [vmem:[%s2233_s20 + $0xbc] sm:$0x1] }
  0x2f   : > { %v945_v36 = vsel %vm2275_vm4, %v940_v28, %v944_v11  ;;  %v981_v37 = vor.u32 %v980_v30, %v977_v29  ;;  %v989_v46 = vshrl.u32 %v1921_v39, 16  ;;  %v992_v47 = vshll.u32 %v1921_v39, 16  ;;  %v2172_v50 = vld [vmem:[%s2233_s20 + $0x8] ss:$8 sps:$4 sm:$0xff]   ;;  %v1925_v53 = vld [vmem:[%s2233_s20 + $0xc0] sm:$0xf] }
  0x30   : > { %v959_v44 = vsel %vm2275_vm4, %v954_v32, %v958_v16  ;;  %v968_v14 = vrot.slane %v967_v33, 4  ;;  %v998_v51 = vshll.u32 %v1922_v40, 16  ;;  %v1003_v52 = vshrl.u32 %v1923_v41, 16  ;;  %v1927_v62 = vld [vmem:[%s2233_s20 + $0xc8] sm:$0xf] }
  0x31   : > { %v1930_v48 = vcombine.low %v945_v36, %v959_v44  ;;  %v982_v49 = vrot.slane %v981_v37, 4  ;;  %v991_v38 = vrot.slane %v989_v46, 4  ;;  %v994_v55 = vrot.slane %v992_v47, 5  ;;  %v1928_v2 = vld [vmem:[%s2233_s20 + $0xcc] sm:$0x1] }
  0x32   : > { %2081 = vmatmul.mubr.msk.bf16.gmra.mxu1 %vm172_vm1, %v2169_v57  ;;  %v973_v54 = vsel %vm2275_vm4, %v968_v14, %v972_v34  ;;  %v1926_v57 = vld [vmem:[%s2233_s20 + $0xc4] sm:$0x1]  ;;  %v1000_v59 = vrot.slane %v998_v51, 5  ;;  %v1005_v60 = vrot.slane %v1003_v52, 4  ;;  %v1012_v61 = vshll.u32 %v1924_v45, 16 }
  0x33   : > { %2096 = vmatprep.mubr.msk.bf16.mxu1 %vm172_vm1, %v1930_v48  ;;  %v987_v58 = vsel %vm2275_vm4, %v982_v49, %v986_v35  ;;  %v995_v0 = vor.u32 %v994_v55, %v991_v38  ;;  %v1020_v5 = vshll.u32 %v1925_v53, 16  ;;  %v1026_v6 = vshll.u32 %v1926_v57, 16  ;;  %v2173_v16 = vld [vmem:[%s2233_s20 + $0x18] ss:$8 sps:$4 sm:$0xff]   ;;  %v2174_v29 = vld [vmem:[%s2233_s20 + $0x28] ss:$8 sps:$4 sm:$0xff]  }
  0x34   : > { %2087 = vmatmul.mubr.msk.bf16.vlgmr.msra.gmra.mxu0 %vm172_vm1, %v2167_v3  ;;  %v1931_v63 = vcombine.low %v973_v54, %v987_v58  ;;  %v1017_v3 = vshrl.u32 %v1925_v53, 16  ;;  %v1014_v4 = vrot.slane %v1012_v61, 5  ;;  %v1031_v7 = vshrl.u32 %v1927_v62, 16  ;;  %v1972_v30 = vld [vmem:[%s2233_s20 + $0x8] sm:$0xf] }
  0x35   : > { %2105 = vmatpush3.bf16.msra.mxu0 %v1206_v56  ;;  %2090 = vmatprep.mubr.msk.bf16.mxu0 %vm172_vm1, %v2170_v8  ;;  %v1006_v56 = vshll.u32 %v1923_v41, 16  ;;  %v996_v8 = vrot.slane %v995_v0, 4  ;;  %v1034_v11 = vshll.u32 %v1927_v62, 16  ;;  %v1022_v12 = vrot.slane %v1020_v5, 5  ;;  %v2176_v32 = vld [vmem:[%s2233_s20 + $0x50] ss:$8 sps:$4 sm:$0xff]  }
  0x36   : > { %2145 = vmatprep.subr.msk.bf16.mxu0 %vm185_vm0, %v2349_v27  ;;  %v1019_v10 = vrot.slane %v1017_v3, 4  ;;  %v1033_v13 = vrot.slane %v1031_v7, 4  ;;  %v1040_v15 = vshll.u32 %v1928_v2, 16  ;;  %v1028_v21 = vrot.slane %v1026_v6, 5  ;;  %v1973_v33 = vld [vmem:[%s2233_s20 + $0xc] sm:$0x1] }
  0x37   : > { %v1008_v1 = vrot.slane %v1006_v56, 5  ;;  %v1001_v17 = vsel %vm2275_vm4, %v996_v8, %v1000_v59  ;;  %v1036_v19 = vrot.slane %v1034_v11, 5  ;;  %v1587_v25 = vsel %vm185_vm0, %v2349_v27, 0  ;;  %v1974_v34 = vld [vmem:[%s2233_s20 + $0x10] sm:$0xf] }
  0x38   : > { %v1023_v20 = vor.u32 %v1022_v12, %v1019_v10  ;;  %v1042_v24 = vrot.slane %v1040_v15, 5  ;;  %v1449_v35 = vshrl.u32 %v1972_v30, 16  ;;  %v1975_v37 = vld [vmem:[%s2233_s20 + $0x14] sm:$0x1]  ;;  %v1452_v39 = vshll.u32 %v1972_v30, 16 }
  0x39   : > { %v1009_v9 = vor.u32 %v1008_v1, %v1005_v60  ;;  %v1037_v23 = vor.u32 %v1036_v19, %v1033_v13  ;;  %v1458_v27 = vshll.u32 %v1973_v33, 16  ;;  %v1463_v40 = vshrl.u32 %v1974_v34, 16  ;;  %v1976_v45 = vld [vmem:[%s2233_s20 + $0x18] sm:$0xf]  ;;  %v1978_v54 = vld [vmem:[%s2233_s20 + $0x20] sm:$0xf] }
  0x3a   : > { %2097 = vmatmul.mubr.msk.bf16.vlgmr.msra.gmra.mxu1 %vm172_vm1, %v1931_v63  ;;  %v1024_v28 = vrot.slane %v1023_v20, 4  ;;  %v1466_v44 = vshll.u32 %v1974_v34, 16  ;;  %v1472_v14 = vshll.u32 %v1975_v37, 16  ;;  %v1454_v47 = vrot.slane %v1452_v39, 5  ;;  %v2175_v51 = vld [vmem:[%s2233_s20 + $0x38] ss:$8 sps:$4 sm:$0xff]  }
  0x3b   : > { %2115 = vmatpush3.bf16.msra.mxu1 %v1341_v31  ;;  %v1010_v18 = vrot.slane %v1009_v9, 4  ;;  %v1038_v31 = vrot.slane %v1037_v23, 4  ;;  %v1460_v48 = vrot.slane %v1458_v27, 5  ;;  %v1465_v49 = vrot.slane %v1463_v40, 4  ;;  %v1979_v38 = vld [vmem:[%s2233_s20 + $0x24] sm:$0x1] }
  0x3c   : > { %2091 = vmatmul.mubr.msk.bf16.gmra.mxu0 %vm172_vm1, %v2171_v42  ;;  %v1029_v36 = vsel %vm2275_vm4, %v1024_v28, %v1028_v21  ;;  %v1451_v42 = vrot.slane %v1449_v35, 4  ;;  %v1468_v52 = vrot.slane %v1466_v44, 5  ;;  %v1474_v53 = vrot.slane %v1472_v14, 5  ;;  %v2177_v63 = vld [vmem:[%s2233_s20 + $0x60] ss:$8 sps:$4 sm:$0xff]  }
  0x3d   : > { %2106 = vmatprep.mubr.msk.bf16.mxu0 %vm172_vm1, %v2172_v50  ;;  %v1015_v22 = vsel %vm2275_vm4, %v1010_v18, %v1014_v4  ;;  %v1043_v41 = vsel %vm2275_vm4, %v1038_v31, %v1042_v24  ;;  %v1977_v50 = vld [vmem:[%s2233_s20 + $0x1c] sm:$0x1]  ;;  %v1477_v56 = vshrl.u32 %v1976_v45, 16  ;;  %v1480_v57 = vshll.u32 %v1976_v45, 16  ;;  %v2178_v6 = vld [vmem:[%s2233_s20 + $0x70] ss:$8 sps:$4 sm:$0xff]  }
  0x3e   : > { %v1932_v26 = vcombine.low %v1001_v17, %v1015_v22  ;;  %v1933_v46 = vcombine.low %v1029_v36, %v1043_v41  ;;  %v1455_v55 = vor.u32 %v1454_v47, %v1451_v42  ;;  %v1486_v58 = vshll.u32 %v1977_v50, 16  ;;  %v1980_v11 = vld [vmem:[%s2233_s20 + $0x28] sm:$0xf]  ;;  %v1981_v15 = vld [vmem:[%s2233_s20 + $0x2c] sm:$0x1] }
  0x3f   : > { %v1469_v59 = vor.u32 %v1468_v52, %v1465_v49  ;;  %v1491_v60 = vshrl.u32 %v1978_v54, 16  ;;  %v1494_v61 = vshll.u32 %v1978_v54, 16  ;;  %v1500_v62 = vshll.u32 %v1979_v38, 16  ;;  %v1983_v17 = vld [vmem:[%s2233_s20 + $0x34] sm:$0x1] }
  0x40   : > { %2100 = vmatprep.mubr.msk.bf16.mxu1 %vm172_vm1, %v1932_v26  ;;  %v1456_v0 = vrot.slane %v1455_v55, 4  ;;  %v1479_v1 = vrot.slane %v1477_v56, 4  ;;  %v1482_v2 = vrot.slane %v1480_v57, 5  ;;  %v1488_v9 = vrot.slane %v1486_v58, 5  ;;  %v1984_v22 = vld [vmem:[%s2233_s20 + $0x38] sm:$0xf] }
  0x41   : > { %v1470_v3 = vrot.slane %v1469_v59, 4  ;;  %v1493_v4 = vrot.slane %v1491_v60, 4  ;;  %v1496_v5 = vrot.slane %v1494_v61, 5  ;;  %v1502_v10 = vrot.slane %v1500_v62, 5  ;;  %v1985_v28 = vld [vmem:[%s2233_s20 + $0x3c] sm:$0x1] }
  0x42   : > { %2101 = vmatmul.mubr.msk.bf16.gmra.mxu1 %vm172_vm1, %v1933_v46  ;;  %v1461_v7 = vsel %vm2275_vm4, %v1456_v0, %v1460_v48  ;;  %v1483_v8 = vor.u32 %v1482_v2, %v1479_v1  ;;  %v1505_v20 = vshrl.u32 %v1980_v11, 16  ;;  %v1508_v21 = vshll.u32 %v1980_v11, 16  ;;  %v1986_v33 = vld [vmem:[%s2233_s20 + $0x40] sm:$0xf]  ;;  %v1987_v39 = vld [vmem:[%s2233_s20 + $0x44] sm:$0x1] }
  0x43   : > { %2116 = vmatprep.mubr.msk.bf16.mxu1 %vm172_vm1, %v2176_v32  ;;  %v1475_v12 = vsel %vm2275_vm4, %v1470_v3, %v1474_v53  ;;  %v1497_v13 = vor.u32 %v1496_v5, %v1493_v4  ;;  %v1514_v24 = vshll.u32 %v1981_v15, 16  ;;  %v1528_v32 = vshll.u32 %v1983_v17, 16  ;;  %v2179_v47 = vld [vmem:[%s2233_s20 + $0x80] ss:$8 sps:$4 sm:$0xff]  }
  0x44   : > { %2107 = vmatmul.mubr.msk.bf16.vlgmr.msra.gmra.mxu0 %vm172_vm1, %v2173_v16  ;;  %v1982_v16 = vld [vmem:[%s2233_s20 + $0x30] sm:$0xf]  ;;  %v1989_v18 = vcombine.low %v1461_v7, %v1475_v12  ;;  %v1484_v19 = vrot.slane %v1483_v8, 4  ;;  %v1507_v30 = vrot.slane %v1505_v20, 4  ;;  %v1510_v31 = vrot.slane %v1508_v21, 5 }
  0x45   : > { %2125 = vmatpush3.bf16.msra.mxu0 %v1587_v25  ;;  %2110 = vmatprep.mubr.msk.bf16.mxu0 %vm172_vm1, %v2174_v29  ;;  %v1498_v23 = vrot.slane %v1497_v13, 4  ;;  %v1519_v25 = vshrl.u32 %v1982_v16, 16  ;;  %v1522_v26 = vshll.u32 %v1982_v16, 16  ;;  %v1516_v35 = vrot.slane %v1514_v24, 5 }
  0x46   : > { %v1489_v29 = vsel %vm2275_vm4, %v1484_v19, %v1488_v9  ;;  %v1511_v40 = vor.u32 %v1510_v31, %v1507_v30  ;;  %v1530_v41 = vrot.slane %v1528_v32, 5  ;;  %v1533_v42 = vshrl.u32 %v1984_v22, 16 }
  0x47   : > { %v1503_v34 = vsel %vm2275_vm4, %v1498_v23, %v1502_v10  ;;  %v1521_v36 = vrot.slane %v1519_v25, 4  ;;  %v1524_v37 = vrot.slane %v1522_v26, 5  ;;  %v1536_v14 = vshll.u32 %v1984_v22, 16 }
  0x48   : > { %v1990_v27 = vcombine.low %v1489_v29, %v1503_v34  ;;  %v1542_v45 = vshll.u32 %v1985_v28, 16  ;;  %v1547_v46 = vshrl.u32 %v1986_v33, 16  ;;  %v1512_v48 = vrot.slane %v1511_v40, 4 }
  0x49   : > { %v1525_v44 = vor.u32 %v1524_v37, %v1521_v36  ;;  %v1535_v49 = vrot.slane %v1533_v42, 4  ;;  %v1550_v50 = vshll.u32 %v1986_v33, 16  ;;  %v1538_v53 = vrot.slane %v1536_v14, 5 }
  0x4a   : > { %2117 = vmatmul.mubr.msk.bf16.vlgmr.msra.gmra.mxu1 %vm172_vm1, %v2177_v63  ;;  %v1549_v54 = vrot.slane %v1547_v46, 4  ;;  %v1517_v38 = vsel %vm2275_vm4, %v1512_v48, %v1516_v35  ;;  %v1544_v58 = vrot.slane %v1542_v45, 5  ;;  %vm1783_vm5 = vcmask 523264  }
  0x4b   : > { %2120 = vmatprep.mubr.msk.bf16.mxu1 %vm172_vm1, %v2178_v6  ;;  %v1526_v52 = vrot.slane %v1525_v44, 4  ;;  %v1552_v55 = vrot.slane %v1550_v50, 5  ;;  %v1539_v57 = vor.u32 %v1538_v53, %v1535_v49 }
  0x4c   : > { %2111 = vmatmul.mubr.msk.bf16.gmra.mxu0 %vm172_vm1, %v2175_v51  ;;  %v1556_v51 = vshll.u32 %v1987_v39, 16 }
  0x4d   : > { %2126 = vmatprep.mubr.msk.bf16.mxu0 %vm172_vm1, %v1989_v18  ;;  %v1531_v56 = vsel %vm2275_vm4, %v1526_v52, %v1530_v41  ;;  %v1553_v60 = vor.u32 %v1552_v55, %v1549_v54  ;;  %v1540_v62 = vrot.slane %v1539_v57, 4 }
  0x4e   : > { %v1991_v59 = vcombine.low %v1517_v38, %v1531_v56  ;;  %v1558_v61 = vrot.slane %v1556_v51, 5 }
  0x4f   : > { %v1554_v63 = vrot.slane %v1553_v60, 4  ;;  %v1545_v0 = vsel %vm2275_vm4, %v1540_v62, %v1544_v58 }
  0x51   : > { %v1559_v1 = vsel %vm2275_vm4, %v1554_v63, %v1558_v61 }
  0x52   : > { %2121 = vmatmul.mubr.msk.bf16.gmra.mxu1 %vm172_vm1, %v2179_v47  ;;  %v1992_v2 = vcombine.low %v1545_v0, %v1559_v1 }
  0x54   : > { %2127 = vmatmul.mubr.msk.bf16.vlgmr.msra.gmra.mxu0 %vm172_vm1, %v1990_v27 }
  0x55   : > { %2130 = vmatprep.mubr.msk.bf16.mxu0 %vm172_vm1, %v1991_v59 }
  0x5c   : > { %2131 = vmatmul.mubr.msk.bf16.gmra.mxu0 %vm172_vm1, %v1992_v2 }
  0xd1   : > { %v2048_v5 = vpop.f32.mrf.mxu0 }
  0xd2   : > { %v2440_v3 = vpop.f32.mrf.mxu1 }
  0xd3   : > { %v223_v8 = vpop.f32.mrf.mxu0 }
  0xd4   : > { %v239_v4 = vpop.f32.mrf.mxu1 }
  0xd5   : > { %v2049_v11 = vpop.f32.mrf.mxu0 }
  0xd6   : > { %v2442_v6 = vpop.f32.mrf.mxu1 }
  0xd7   : > { %v226_v15 = vpop.f32.mrf.mxu0 }
  0xd8   : > { %v2444_v7 = vpop.f32.mrf.mxu1 }
  0xda   : > { %v2058_v9 = vpop.f32.mrf.mxu1 }
  0xdb   : > { %v383_v50 = vadd.f32 %v2058_v9, %v2048_v5 }
  0xdc   : > { %v342_v10 = vpop.f32.mrf.mxu1 }
  0xdd   : > { %v381_v47 = vadd.f32 %v342_v10, %v223_v8 }
  0xde   : > { %v2059_v12 = vpop.f32.mrf.mxu1 }
  0xdf   : > { %v384_v52 = vadd.f32 %v2059_v12, %v2049_v11 }
  0xe0   : > { %v345_v13 = vpop.f32.mrf.mxu1 }
  0xe1   : > { %v2068_v16 = vpop.f32.mrf.mxu0  ;;  %v382_v51 = vadd.f32 %v345_v13, %v226_v15 }
  0xe2   : > { %v2062_v43 = vpop.f32.mrf.mxu1  ;;  %v632_v56 = vadd.f32 %v2068_v16, %v383_v50 }
  0xe3   : > { %v591_v18 = vpop.f32.mrf.mxu0  ;;  %v387_v9 = vadd.f32 %v2062_v43, %v2440_v3 }
  0xe4   : > { %v358_v17 = vpop.f32.mrf.mxu1  ;;  %v630_v54 = vadd.f32 %v591_v18, %v381_v47 }
  0xe5   : > { %v2069_v20 = vpop.f32.mrf.mxu0  ;;  %v385_v62 = vadd.f32 %v358_v17, %v239_v4 }
  0xe6   : > { %v2063_v19 = vpop.f32.mrf.mxu1  ;;  %v633_v60 = vadd.f32 %v2069_v20, %v384_v52 }
  0xe7   : > { %v594_v22 = vpop.f32.mrf.mxu0  ;;  %v388_v20 = vadd.f32 %v2063_v19, %v2442_v6 }
  0xe8   : > { %v361_v21 = vpop.f32.mrf.mxu1  ;;  %v631_v57 = vadd.f32 %v594_v22, %v382_v51 }
  0xe9   : > { %v386_v11 = vadd.f32 %v361_v21, %v2444_v7 }
  0xea   : > { %v2078_v23 = vpop.f32.mrf.mxu1 }
  0xeb   : > { %v767_v63 = vadd.f32 %v2078_v23, %v632_v56 }
  0xec   : > { %v726_v24 = vpop.f32.mrf.mxu1  ;;  %v2072_v25 = vpop.f32.mrf.mxu0 }
  0xed   : > { %v765_v58 = vadd.f32 %v726_v24, %v630_v54 }
  0xee   : > { %v2079_v26 = vpop.f32.mrf.mxu1  ;;  %v607_v28 = vpop.f32.mrf.mxu0 }
  0xef   : > { %v768_v2 = vadd.f32 %v2079_v26, %v633_v60  ;;  %v634_v13 = vadd.f32 %v607_v28, %v385_v62 }
  0xf0   : > { %v729_v29 = vpop.f32.mrf.mxu1  ;;  %v2073_v30 = vpop.f32.mrf.mxu0 }
  0xf1   : > { %v766_v0 = vadd.f32 %v729_v29, %v631_v57  ;;  %v637_v21 = vadd.f32 %v2073_v30, %v388_v20 }
  0xf2   : > { %v2082_v31 = vpop.f32.mrf.mxu1  ;;  %v610_v32 = vpop.f32.mrf.mxu0 }
  0xf3   : > { %v635_v47 = vadd.f32 %v610_v32, %v386_v11 }
  0xf4   : > { %v742_v33 = vpop.f32.mrf.mxu1  ;;  %v2088_v34 = vpop.f32.mrf.mxu0 }
  0xf5   : > { %v902_v15 = vadd.f32 %v2088_v34, %v767_v63  ;;  %v769_v23 = vadd.f32 %v742_v33, %v634_v13 }
  0xf6   : > { %v2446_v35 = vpop.f32.mrf.mxu1  ;;  %v861_v36 = vpop.f32.mrf.mxu0 }
  0xf7   : > { %v900_v10 = vadd.f32 %v861_v36, %v765_v58  ;;  %v636_v36 = vadd.f32 %v2072_v25, %v387_v9  ;;  %v772_v33 = vadd.f32 %v2446_v35, %v637_v21 }
  0xf8   : > { %v2089_v37 = vpop.f32.mrf.mxu0  ;;  %v745_v39 = vpop.f32.mrf.mxu1 }
  0xf9   : > { %v903_v4 = vadd.f32 %v2089_v37, %v768_v2  ;;  %v771_v28 = vadd.f32 %v2082_v31, %v636_v36  ;;  %v770_v34 = vadd.f32 %v745_v39, %v635_v47 }
  0xfa   : > { %v864_v27 = vpop.f32.mrf.mxu0  ;;  %v2098_v41 = vpop.f32.mrf.mxu1 }
  0xfb   : > { %v901_v16 = vadd.f32 %v864_v27, %v766_v0  ;;  %v1148_v24 = vadd.f32 %v2098_v41, %v902_v15 }
  0xfc   : > { %v2448_v40 = vpop.f32.mrf.mxu0  ;;  %v1107_v44 = vpop.f32.mrf.mxu1 }
  0xfd   : > { %v1146_v18 = vadd.f32 %v1107_v44, %v900_v10 }
  0xfe   : > { %v877_v42 = vpop.f32.mrf.mxu0  ;;  %v2099_v45 = vpop.f32.mrf.mxu1 }
  0xff   : > { %v1149_v50 = vadd.f32 %v2099_v45, %v903_v4  ;;  %v904_v44 = vadd.f32 %v877_v42, %v769_v23 }
 0x100   : > { %v2450_v14 = vpop.f32.mrf.mxu0  ;;  %v1110_v48 = vpop.f32.mrf.mxu1 }
 0x101   : > { %v1147_v26 = vadd.f32 %v1110_v48, %v901_v16 }
 0x102   : > { %v2452_v46 = vpop.f32.mrf.mxu0  ;;  %v2102_v38 = vpop.f32.mrf.mxu1 }
 0x103   : > { %v905_v31 = vadd.f32 %v2452_v46, %v770_v34 }
 0x104   : > { %v2108_v49 = vpop.f32.mrf.mxu0  ;;  %v1123_v59 = vpop.f32.mrf.mxu1 }
 0x105   : > { %v1283_v51 = vadd.f32 %v2108_v49, %v1148_v24  ;;  %v1150_v48 = vadd.f32 %v1123_v59, %v904_v44  ;;  %v907_v49 = vadd.f32 %v2450_v14, %v772_v33 }
 0x106   : > { %v1242_v53 = vpop.f32.mrf.mxu0  ;;  %v2103_v1 = vpop.f32.mrf.mxu1 }
 0x107   : > { %v1281_v43 = vadd.f32 %v1242_v53, %v1146_v18  ;;  %v906_v53 = vadd.f32 %v2448_v40, %v771_v28 }
 0x108   : > { %v2109_v55 = vpop.f32.mrf.mxu0  ;;  %v1126_v5 = vpop.f32.mrf.mxu1 }
 0x109   : > { %v1284_v37 = vadd.f32 %v2109_v55, %v1149_v50  ;;  %v1152_v56 = vadd.f32 %v2102_v38, %v906_v53  ;;  %v1151_v55 = vadd.f32 %v1126_v5, %v905_v31 }
 0x10a   : > { %v1245_v61 = vpop.f32.mrf.mxu0  ;;  %v2118_v22 = vpop.f32.mrf.mxu1 }
 0x10b   : > { %v1282_v52 = vadd.f32 %v1245_v61, %v1147_v26  ;;  %v1418_v25 = vadd.f32 %v2118_v22, %v1283_v51  ;;  %v1153_v61 = vadd.f32 %v2103_v1, %v907_v49 }
 0x10c   : > { %v2112_v8 = vpop.f32.mrf.mxu0  ;;  %v1377_v29 = vpop.f32.mrf.mxu1 }
 0x10d   : > { %v1416_v6 = vadd.f32 %v1377_v29, %v1281_v43  ;;  %v1287_v63 = vadd.f32 %v2112_v8, %v1152_v56 }
 0x10e   : > { %v1258_v12 = vpop.f32.mrf.mxu0  ;;  %v2119_v7 = vpop.f32.mrf.mxu1 }
 0x10f   : > { %v1419_v54 = vadd.f32 %v2119_v7, %v1284_v37  ;;  %v1285_v35 = vadd.f32 %v1258_v12, %v1150_v48 }
 0x110   : > { %v2113_v17 = vpop.f32.mrf.mxu0  ;;  %v1380_v19 = vpop.f32.mrf.mxu1 }
 0x111   : > { %v1417_v32 = vadd.f32 %v1380_v19, %v1282_v52  ;;  %v1288_v11 = vadd.f32 %v2113_v17, %v1153_v61 }
 0x112   : > { %v1261_v3 = vpop.f32.mrf.mxu0  ;;  %v2122_v45 = vpop.f32.mrf.mxu1 }
 0x113   : > { %v1286_v10 = vadd.f32 %v1261_v3, %v1151_v55  ;;  %v1422_v13 = vadd.f32 %v2122_v45, %v1287_v63 }
 0x114   : > { %v2128_v27 = vpop.f32.mrf.mxu0  ;;  %v1393_v42 = vpop.f32.mrf.mxu1 }
 0x115   : > { %v2463_v58 = vadd.f32 %v2128_v27, %v1418_v25  ;;  %v1420_v38 = vadd.f32 %v1393_v42, %v1285_v35 }
 0x116   : > { %v1623_v41 = vpop.f32.mrf.mxu0  ;;  %v2123_v60 = vpop.f32.mrf.mxu1 }
 0x117   : > { %v2460_v39 = vadd.f32 %v1623_v41, %v1416_v6  ;;  %v1702_v5 = vmul.f32 %v2463_v58, %v2463_v58  ;;  %v1423_v26 = vadd.f32 %v2123_v60, %v1288_v11 }
 0x118   : > { %v2129_v30 = vpop.f32.mrf.mxu0  ;;  %v1396_v2 = vpop.f32.mrf.mxu1 }
 0x119   : > { %v2467_v40 = vadd.f32 %v2129_v30, %v1419_v54  ;;  %v1700_v46 = vmul.f32 %v2460_v39, %v2460_v39  ;;  %v1421_v8 = vadd.f32 %v1396_v2, %v1286_v10 }
 0x11a   : > { %v1626_v57 = vpop.f32.mrf.mxu0 }
 0x11b   : > { %v2465_v59 = vadd.f32 %v1626_v57, %v1417_v32  ;;  %v1703_v12 = vmul.f32 %v2467_v40, %v2467_v40 }
 0x11c   : > { %v2132_v0 = vpop.f32.mrf.mxu0 }
 0x11d   : > { %v1686_v62 = vadd.f32 %v2465_v59, %v2460_v39  ;;  %v1701_v14 = vmul.f32 %v2465_v59, %v2465_v59  ;;  %v1668_v36 = vadd.f32 %v2132_v0, %v1422_v13 }
 0x11e   : > { %v1639_v15 = vpop.f32.mrf.mxu0 }
 0x11f   : > { %v1687_v1 = vadd.f32 %v1686_v62, %v2463_v58  ;;  %v1708_v9 = vadd.f32 %v1701_v14, %v1700_v46  ;;  %v1666_v18 = vadd.f32 %v1639_v15, %v1420_v38  ;;  %v1706_v7 = vmul.f32 %v1668_v36, %v1668_v36 }
 0x120   : > { %v2133_v20 = vpop.f32.mrf.mxu0 }
 0x121   : > { %v1709_v16 = vadd.f32 %v1708_v9, %v1702_v5  ;;  %v1688_v22 = vadd.f32 %v1687_v1, %v2467_v40  ;;  %v1704_v23 = vmul.f32 %v1666_v18, %v1666_v18  ;;  %v1669_v17 = vadd.f32 %v2133_v20, %v1423_v26 }
 0x122   : > { %v1642_v29 = vpop.f32.mrf.mxu0 }
 0x123   : > { %v1689_v4 = vadd.f32 %v1688_v22, %v1666_v18  ;;  %v1710_v24 = vadd.f32 %v1709_v16, %v1703_v12  ;;  %v1667_v50 = vadd.f32 %v1642_v29, %v1421_v8  ;;  %v1707_v34 = vmul.f32 %v1669_v17, %v1669_v17 }
 0x125   : > { %v1711_v47 = vadd.f32 %v1710_v24, %v1704_v23  ;;  %v1690_v3 = vadd.f32 %v1689_v4, %v1667_v50  ;;  %v1705_v43 = vmul.f32 %v1667_v50, %v1667_v50 }
 0x127   : > { %v1691_v21 = vadd.f32 %v1690_v3, %v1668_v36  ;;  %v1712_v28 = vadd.f32 %v1711_v47, %v1705_v43 }
 0x129   : > { %v1692_v27 = vadd.f32 %v1691_v21, %v1669_v17  ;;  %v1713_v44 = vadd.f32 %v1712_v28, %v1706_v7 }
 0x12b   : > { %v1693_v51 = vrot.slane %v1692_v27, 4  ;;  %v1714_v52 = vadd.f32 %v1713_v44, %v1707_v34 }
 0x12d   : > { %v1694_v6 = vadd.f32 %v1693_v51, %v1692_v27  ;;  %v1715_v19 = vrot.slane %v1714_v52, 4 }
 0x12f   : > { %v1695_v33 = vrot.slane %v1694_v6, 2  ;;  %v1716_v37 = vadd.f32 %v1715_v19, %v1714_v52 }
 0x131   : > { %v1696_v41 = vadd.f32 %v1695_v33, %v1694_v6  ;;  %v1717_v48 = vrot.slane %v1716_v37, 2 }
 0x133   : > { %v1697_v25 = vrot.slane %v1696_v41, 1  ;;  %v1718_v32 = vadd.f32 %v1717_v48, %v1716_v37 }
 0x135   : > { %v1698_v45 = vadd.f32 %v1697_v25, %v1696_v41  ;;  %v1719_v53 = vrot.slane %v1718_v32, 1 }
 0x137   : > { %v1699_v54 = vmul.f32 0.015625, %v1698_v45  ;;  %v1720_v30 = vadd.f32 %v1719_v53, %v1718_v32 }
 0x139   : > { %v1721_v31 = vmul.f32 0.015625, %v1720_v30  ;;  %v1722_v42 = vmul.f32 %v1699_v54, %v1699_v54  ;;  %v1725_v35 = vsub.f32 %v2460_v39, %v1699_v54  ;;  %v1726_v61 = vsub.f32 %v2465_v59, %v1699_v54 }
 0x13a   : > { %v1727_v14 = vsub.f32 %v2463_v58, %v1699_v54  ;;  %v1728_v0 = vsub.f32 %v2467_v40, %v1699_v54  ;;  %v1729_v5 = vsub.f32 %v1666_v18, %v1699_v54  ;;  %v1730_v9 = vsub.f32 %v1667_v50, %v1699_v54 }
 0x13b   : > { %v1723_v49 = vsub.f32 %v1721_v31, %v1722_v42  ;;  %v1731_v12 = vsub.f32 %v1668_v36, %v1699_v54  ;;  %v1732_v15 = vsub.f32 %v1669_v17, %v1699_v54 }
 0x13d   : > { %v1724_v56 = vmax.f32 %v1723_v49, 0.0 }
 0x13f   : > { %v1733_v57 = vadd.f32 1e-05, %v1724_v56 }
 0x141   : > { %2180 = vrsqrt.f32 %v1733_v57 }
 0x14e   : > { %v2181_v55 = vpop.eup %2180 }
 0x14f   : > { %v1735_v60 = vmul.f32 %v2181_v55, %v1725_v35  ;;  %v1736_v62 = vmul.f32 %v2181_v55, %v1726_v61  ;;  %v1737_v63 = vmul.f32 %v2181_v55, %v1727_v14  ;;  %v1738_v10 = vmul.f32 %v2181_v55, %v1728_v0 }
 0x150   : > { %v1739_v39 = vmul.f32 %v2181_v55, %v1729_v5  ;;  %v1740_v11 = vmul.f32 %v2181_v55, %v1730_v9  ;;  %v1741_v58 = vmul.f32 %v2181_v55, %v1731_v12  ;;  %v1742_v22 = vmul.f32 %v2181_v55, %v1732_v15 }
 0x151   : > { %v1743_v46 = vmax.f32 %v1735_v60, 0.0  ;;  %v1744_v38 = vmax.f32 %v1736_v62, 0.0  ;;  %v1745_v2 = vmax.f32 %v1737_v63, 0.0  ;;  %v1746_v1 = vmax.f32 %v1738_v10, 0.0 }
 0x152   : > { %v1747_v59 = vmax.f32 %v1739_v39, 0.0  ;;  %v1748_v13 = vmax.f32 %v1740_v11, 0.0  ;;  %v1749_v16 = vmax.f32 %v1741_v58, 0.0  ;;  %v1750_v40 = vmax.f32 %v1742_v22, 0.0 }
 0x153   : > { %1751 = vxpose.xlu0.b32.start [1/8] (short) (narrow) %v1743_v46, 8 }
 0x157   : > { %1752 = vxpose.xlu0.b32.cont [2/8] (short) (narrow) %v1744_v38, 8 }
 0x15b   : > { %1753 = vxpose.xlu0.b32.cont [3/8] (short) (narrow) %v1745_v2, 8 }
 0x15f   : > { %1754 = vxpose.xlu0.b32.cont [4/8] (short) (narrow) %v1746_v1, 8 }
 0x163   : > { %1755 = vxpose.xlu0.b32.cont [5/8] (short) (narrow) %v1747_v59, 8 }
 0x167   : > { %1756 = vxpose.xlu0.b32.cont [6/8] (short) (narrow) %v1748_v13, 8 }
 0x16b   : > { %1757 = vxpose.xlu0.b32.cont [7/8] (short) (narrow) %v1749_v16, 8 }
 0x16f   : > { %1758 = vxpose.xlu0.b32.end [8/8] (short) (narrow) %v1750_v40, 8 }
 0x1cf   : > { %v1767_v18 = vpop.trf.xlu0 }
 0x1d0   : > { %1784 = vst.msk [vmem:[%s141_s8] sm:$0xff] %vm1783_vm5, %v1767_v18 }
 0x1d1 PF: > { %s12_s9 = sadd.s32 1, %s2188_s9  }
 0x1d2   : > { %p9_p4 = scmp.ge.s32.totalorder %s12_s9, 4  }
 0x1d4   :  { %11 = sbr.rel (!%p9_p4) target bundleno = 1 (0x1), region = 71 }

</bundles_post_ra>
